<compile_context>
chip_gen: v7x
topology: tpu7x:2x2x1
jax: 0.10.0
libtpu: 0.0.40
codegen_flags: <defaults>
</compile_context>

<pallas_src>
import functools
import math

import jax
import jax.numpy as jnp
from jax.experimental import pallas as pl
from jax.experimental.pallas import tpu as pltpu


INPUT_DIM = 8      # 8 tabular features selected in the reference script
HIDDEN_DIM = 10
OUTPUT_DIM = 1

LANE = 128
PACK = LANE // INPUT_DIM            # 16 samples packed per 128-lane row
H_E = PACK * HIDDEN_DIM             # 160: expanded (packed) hidden width
O_E = PACK * OUTPUT_DIM             # 16 : expanded (packed) output width


def _round_up(n, m):
    return ((n + m - 1) // m) * m


def _mlp_kernel(xp_ref, w1_ref, b1_ref, w2_ref, b2_ref, w3_ref, b3_ref, o_ref):
    """Fused 3-layer MLP on one packed batch tile.

    xp_ref : (TR, 128) f32   — 16 samples per row, 8 features each (lane-dense)
    wNe    : block-diagonal expanded weights, bf16
             w1e (128, 160), w2e (160, 160), w3e (160, 16)
    bNe    : (1, 160) / (1, 160) / (1, 16) f32
    o_ref  : (TR, 16) bf16   — sample (r, g) is batch row 16*r + g
    """
    x = xp_ref[...].astype(jnp.bfloat16)                                    # (TR, 128)

    h1 = jnp.dot(x, w1_ref[...], preferred_element_type=jnp.float32) + b1_ref[...]
    h1 = jnp.maximum(h1, 0.0)                                               # (TR, 160) f32

    h2 = jnp.dot(h1.astype(jnp.bfloat16), w2_ref[...],
                 preferred_element_type=jnp.float32) + b2_ref[...]
    h2 = jnp.maximum(h2, 0.0)                                               # (TR, 160) f32

    h3 = jnp.dot(h2.astype(jnp.bfloat16), w3_ref[...],
                 preferred_element_type=jnp.float32) + b3_ref[...]          # (TR, 16)  f32
    o_ref[...] = jax.nn.sigmoid(h3).astype(o_ref.dtype)                     # (TR, 16)  bf16


def _expand_params(params):
    """Build block-diagonal expanded weights for the 16-samples-per-row packing.

    With xp[r, 8g+f] = x[16r+g, f], the expanded matmuls give
    (xp @ w1e)[r, 16j+g] = sum_f w1[j, f] * x[16r+g, f], etc., i.e. the exact
    same Linear layers, just with the batch packed along the lane axis.
    Weights -> bf16 (MXU path); biases stay f32.
    """
    w1, b1, w2, b2, w3, b3 = params
    eye = jnp.eye(PACK, dtype=jnp.float32)

    w1e = jnp.einsum("jf,ab->afjb", w1, eye).reshape(LANE, H_E).astype(jnp.bfloat16)
    w2e = jnp.einsum("kj,ab->jakb", w2, eye).reshape(H_E, H_E).astype(jnp.bfloat16)
    w3e = jnp.einsum("ok,ab->kaob", w3, eye).reshape(H_E, O_E).astype(jnp.bfloat16)

    b1e = jnp.repeat(b1.reshape(-1, 1), PACK, axis=1).reshape(1, H_E)
    b2e = jnp.repeat(b2.reshape(-1, 1), PACK, axis=1).reshape(1, H_E)
    b3e = jnp.repeat(b3.reshape(-1, 1), PACK, axis=1).reshape(1, O_E)
    return w1e, b1e, w2e, b2e, w3e, b3e


@functools.partial(jax.jit, static_argnames=("batch_tile",))
def mlp_forward(x, params, *, batch_tile=65536):
    """x: (B, INPUT_DIM) float32.  Returns (B, OUTPUT_DIM) float32 in [0, 1]."""
    B, D = x.shape
    assert D == INPUT_DIM

    w1e, b1e, w2e, b2e, w3e, b3e = _expand_params(params)

    # Pack 16 samples per 128-lane row.  A row-major reshape is free (no data
    # movement); only batches that are not a multiple of 16 pay a pad copy.
    B_pad = _round_up(B, PACK)
    if B_pad != B:
        x = jnp.pad(x, ((0, B_pad - B), (0, 0)))
    R = B_pad // PACK
    xp = x.reshape(R, LANE)

    # Tile the packed-row axis (1 row = 16 samples).  Per sample the step moves
    # ~34 B of HBM, so 65536 samples/step ≈ 2.2 MB — comfortably amortizes the
    # ~0.35 us per-step overhead.  VMEM ≈ 290 B/sample -> ~19 MiB at default.
    req_rows = max(8, _round_up(batch_tile, LANE) // PACK)
    if R <= 8:
        tile_rows = R                                  # tiny batch: full-array block
    else:
        tile_rows = min(req_rows, _round_up(R, 8))
        # Keep >= 2 grid steps so v7x's two TensorCores both get work.
        tile_rows = min(tile_rows, max(8, _round_up(pl.cdiv(R, 2), 8)))
    grid = (pl.cdiv(R, tile_rows),)                    # partial last block is fine

    out_p = pl.pallas_call(
        _mlp_kernel,
        out_shape=jax.ShapeDtypeStruct((R, O_E), jnp.bfloat16),
        grid_spec=pltpu.PrefetchScalarGridSpec(
            num_scalar_prefetch=0,
            grid=grid,
            in_specs=[
                pl.BlockSpec((tile_rows, LANE), lambda i: (i, 0)),   # packed x tile
                # Tiny parameters: full-array blocks, constant index_map -> VMEM-resident.
                pl.BlockSpec(w1e.shape, lambda i: (0, 0)),
                pl.BlockSpec(b1e.shape, lambda i: (0, 0)),
                pl.BlockSpec(w2e.shape, lambda i: (0, 0)),
                pl.BlockSpec(b2e.shape, lambda i: (0, 0)),
                pl.BlockSpec(w3e.shape, lambda i: (0, 0)),
                pl.BlockSpec(b3e.shape, lambda i: (0, 0)),
            ],
            out_specs=pl.BlockSpec((tile_rows, O_E), lambda i: (i, 0)),
        ),
        compiler_params=pltpu.CompilerParams(
            dimension_semantics=("parallel",),
            vmem_limit_bytes=48 * 1024 * 1024,   # > v5e's 16 MiB default, < v7x's 64 MiB
        ),
    )(xp, w1e, b1e, w2e, b2e, w3e, b3e)

    # (R, 16) bf16 -> (B, 1) f32; the slice drops padded tail samples.
    # NOTE: bf16 matmuls/output deviate from the torch f32 forward by ~1e-3.
    return out_p.reshape(B_pad, 1)[:B].astype(jnp.float32)


def init_params(key):
    """Deterministic init mimicking torch.nn.Linear default U(-1/sqrt(fan_in), +).

    Weights stored exactly like torch: (out_features, in_features); biases (out,).
    """
    def linear(key, fan_in, fan_out):
        kw, kb = jax.random.split(key)
        bound = 1.0 / math.sqrt(fan_in)
        w = jax.random.uniform(kw, (fan_out, fan_in), jnp.float32, -bound, bound)
        b = jax.random.uniform(kb, (fan_out,), jnp.float32, -bound, bound)
        return w, b

    k1, k2, k3 = jax.random.split(key, 3)
    w1, b1 = linear(k1, INPUT_DIM, HIDDEN_DIM)
    w2, b2 = linear(k2, HIDDEN_DIM, HIDDEN_DIM)
    w3, b3 = linear(k3, HIDDEN_DIM, OUTPUT_DIM)
    return (w1, b1, w2, b2, w3, b3)


def mlp_forward_ref(x, params):
    """Pure-JAX f32 reference of the PyTorch forward (for correctness check)."""
    w1, b1, w2, b2, w3, b3 = params
    h1 = jnp.maximum(x @ w1.T + b1, 0.0)
    h2 = jnp.maximum(h1 @ w2.T + b2, 0.0)
    return jax.nn.sigmoid(h2 @ w3.T + b3)


# TODO(synk): fit()/Adam training loop, sklearn metrics and matplotlib plotting from the
# reference script are host-side utilities, not kernel work — intentionally not ported.

if __name__ == "__main__":
    key = jax.random.PRNGKey(0)
    kx, kp = jax.random.split(key)
    params = init_params(kp)

    # Small batch that is NOT a multiple of 16: exercises the pad path and the
    # partial last grid block; a small tile forces a multi-step grid.
    batch = 300
    x = jax.random.normal(kx, (batch, INPUT_DIM), jnp.float32)
    y = mlp_forward(x, params, batch_tile=1024)
    jax.block_until_ready(y)

    y_ref = mlp_forward_ref(x, params)
    assert y.shape == (batch, OUTPUT_DIM)
    err = float(jnp.max(jnp.abs(y - y_ref)))
    assert err < 2e-2, err

    # Default (large-tile) path on a multiple-of-128 batch: zero-copy packing.
    batch2 = 4096
    x2 = jax.random.normal(jax.random.PRNGKey(1), (batch2, INPUT_DIM), jnp.float32)
    y2 = mlp_forward(x2, params)
    jax.block_until_ready(y2)
    err2 = float(jnp.max(jnp.abs(y2 - mlp_forward_ref(x2, params))))
    assert err2 < 2e-2, err2

    print("KERNEL_OK")
</pallas_src>

<mosaic_0001>
module attributes {stable_mosaic.version = 11 : i64} {
  func.func @_mlp_kernel(%arg0: i32, %arg1: memref<16x128xf32, #tpu.memory_space<vmem>>, %arg2: memref<128x160xbf16, #tpu.memory_space<vmem>>, %arg3: memref<1x160xf32, #tpu.memory_space<vmem>>, %arg4: memref<160x160xbf16, #tpu.memory_space<vmem>>, %arg5: memref<1x160xf32, #tpu.memory_space<vmem>>, %arg6: memref<160x16xbf16, #tpu.memory_space<vmem>>, %arg7: memref<1x16xf32, #tpu.memory_space<vmem>>, %arg8: memref<16x16xbf16, #tpu.memory_space<vmem>>) attributes {dimension_semantics = [#tpu.dimension_semantics<parallel>], iteration_bounds = array<i64: 2>, scalar_prefetch = 0 : i64, scratch_operands = 0 : i64, tpu.core_type = #tpu.core_type<tc>, window_params = [{transform_indices = @transform_0, window_bounds = array<i64: 16, 128>}, {pipeline_mode = #tpu.pipeline_mode<synchronous>, transform_indices = @transform_1, window_bounds = array<i64: 128, 160>}, {pipeline_mode = #tpu.pipeline_mode<synchronous>, transform_indices = @transform_2, window_bounds = array<i64: 1, 160>}, {pipeline_mode = #tpu.pipeline_mode<synchronous>, transform_indices = @transform_3, window_bounds = array<i64: 160, 160>}, {pipeline_mode = #tpu.pipeline_mode<synchronous>, transform_indices = @transform_4, window_bounds = array<i64: 1, 160>}, {pipeline_mode = #tpu.pipeline_mode<synchronous>, transform_indices = @transform_5, window_bounds = array<i64: 160, 16>}, {pipeline_mode = #tpu.pipeline_mode<synchronous>, transform_indices = @transform_6, window_bounds = array<i64: 1, 16>}, {transform_indices = @transform_7, window_bounds = array<i64: 16, 16>}]} {
    %c0 = arith.constant 0 : index
    %c0_0 = arith.constant 0 : index
    %0 = vector.load %arg1[%c0, %c0_0] : memref<16x128xf32, #tpu.memory_space<vmem>>, vector<16x128xf32>
    %1 = arith.truncf %0 : vector<16x128xf32> to vector<16x128xbf16>
    %c0_1 = arith.constant 0 : index
    %c0_2 = arith.constant 0 : index
    %2 = vector.load %arg2[%c0_1, %c0_2] : memref<128x160xbf16, #tpu.memory_space<vmem>>, vector<128x160xbf16>
    %cst = arith.constant dense<0.000000e+00> : vector<16x160xf32>
    %3 = tpu.matmul %1, %2, %cst {dimension_numbers = #tpu.dot_dimension_numbers<[1], [0], [0], [1], [0, 0, 1, 1], [], []>} : vector<16x128xbf16>, vector<128x160xbf16>, vector<16x160xf32> -> vector<16x160xf32>
    %c0_3 = arith.constant 0 : index
    %c0_4 = arith.constant 0 : index
    %4 = vector.load %arg3[%c0_3, %c0_4] : memref<1x160xf32, #tpu.memory_space<vmem>>, vector<1x160xf32>
    %5 = vector.broadcast %4 : vector<1x160xf32> to vector<16x160xf32>
    %6 = arith.addf %3, %5 : vector<16x160xf32>
    %cst_5 = arith.constant 0.000000e+00 : f32
    %7 = vector.broadcast %cst_5 : f32 to vector<16x160xf32>
    %8 = arith.maximumf %6, %7 : vector<16x160xf32>
    %9 = arith.truncf %8 : vector<16x160xf32> to vector<16x160xbf16>
    %c0_6 = arith.constant 0 : index
    %c0_7 = arith.constant 0 : index
    %10 = vector.load %arg4[%c0_6, %c0_7] : memref<160x160xbf16, #tpu.memory_space<vmem>>, vector<160x160xbf16>
    %cst_8 = arith.constant dense<0.000000e+00> : vector<16x160xf32>
    %11 = tpu.matmul %9, %10, %cst_8 {dimension_numbers = #tpu.dot_dimension_numbers<[1], [0], [0], [1], [0, 0, 1, 1], [], []>} : vector<16x160xbf16>, vector<160x160xbf16>, vector<16x160xf32> -> vector<16x160xf32>
    %c0_9 = arith.constant 0 : index
    %c0_10 = arith.constant 0 : index
    %12 = vector.load %arg5[%c0_9, %c0_10] : memref<1x160xf32, #tpu.memory_space<vmem>>, vector<1x160xf32>
    %13 = vector.broadcast %12 : vector<1x160xf32> to vector<16x160xf32>
    %14 = arith.addf %11, %13 : vector<16x160xf32>
    %cst_11 = arith.constant 0.000000e+00 : f32
    %15 = vector.broadcast %cst_11 : f32 to vector<16x160xf32>
    %16 = arith.maximumf %14, %15 : vector<16x160xf32>
    %17 = arith.truncf %16 : vector<16x160xf32> to vector<16x160xbf16>
    %c0_12 = arith.constant 0 : index
    %c0_13 = arith.constant 0 : index
    %18 = vector.load %arg6[%c0_12, %c0_13] : memref<160x16xbf16, #tpu.memory_space<vmem>>, vector<160x16xbf16>
    %cst_14 = arith.constant dense<0.000000e+00> : vector<16x16xf32>
    %19 = tpu.matmul %17, %18, %cst_14 {dimension_numbers = #tpu.dot_dimension_numbers<[1], [0], [0], [1], [0, 0, 1, 1], [], []>} : vector<16x160xbf16>, vector<160x16xbf16>, vector<16x16xf32> -> vector<16x16xf32>
    %c0_15 = arith.constant 0 : index
    %c0_16 = arith.constant 0 : index
    %20 = vector.load %arg7[%c0_15, %c0_16] : memref<1x16xf32, #tpu.memory_space<vmem>>, vector<1x16xf32>
    %21 = vector.broadcast %20 : vector<1x16xf32> to vector<16x16xf32>
    %22 = arith.addf %19, %21 : vector<16x16xf32>
    %23 = arith.negf %22 : vector<16x16xf32>
    %24 = math.exp %23 : vector<16x16xf32>
    %cst_17 = arith.constant 1.000000e+00 : f32
    %25 = vector.broadcast %cst_17 : f32 to vector<16x16xf32>
    %26 = arith.addf %25, %24 : vector<16x16xf32>
    %27 = arith.divf %25, %26 : vector<16x16xf32>
    %28 = arith.truncf %27 : vector<16x16xf32> to vector<16x16xbf16>
    %c0_18 = arith.constant 0 : index
    %c0_19 = arith.constant 0 : index
    %29 = vector.load %arg8[%c0_18, %c0_19] : memref<16x16xbf16, #tpu.memory_space<vmem>>, vector<16x16xbf16>
    tpu.vector_store %arg8[%c0_18, %c0_19], %28 {strides = array<i32>} : memref<16x16xbf16, #tpu.memory_space<vmem>>, vector<16x16xbf16>,
    return
  }
  func.func @transform_0(%arg0: i32) -> (i32, i32) {
    %c0_i32 = arith.constant 0 : i32
    %c0_i32_0 = arith.constant 0 : i32
    return %arg0, %c0_i32 : i32, i32
  }
  func.func @transform_1(%arg0: i32) -> (i32, i32) {
    %c0_i32 = arith.constant 0 : i32
    %c0_i32_0 = arith.constant 0 : i32
    %c0_i32_1 = arith.constant 0 : i32
    return %c0_i32, %c0_i32_0 : i32, i32
  }
  func.func @transform_2(%arg0: i32) -> (i32, i32) {
    %c0_i32 = arith.constant 0 : i32
    %c0_i32_0 = arith.constant 0 : i32
    %c0_i32_1 = arith.constant 0 : i32
    return %c0_i32, %c0_i32_0 : i32, i32
  }
  func.func @transform_3(%arg0: i32) -> (i32, i32) {
    %c0_i32 = arith.constant 0 : i32
    %c0_i32_0 = arith.constant 0 : i32
    %c0_i32_1 = arith.constant 0 : i32
    return %c0_i32, %c0_i32_0 : i32, i32
  }
  func.func @transform_4(%arg0: i32) -> (i32, i32) {
    %c0_i32 = arith.constant 0 : i32
    %c0_i32_0 = arith.constant 0 : i32
    %c0_i32_1 = arith.constant 0 : i32
    return %c0_i32, %c0_i32_0 : i32, i32
  }
  func.func @transform_5(%arg0: i32) -> (i32, i32) {
    %c0_i32 = arith.constant 0 : i32
    %c0_i32_0 = arith.constant 0 : i32
    %c0_i32_1 = arith.constant 0 : i32
    return %c0_i32, %c0_i32_0 : i32, i32
  }
  func.func @transform_6(%arg0: i32) -> (i32, i32) {
    %c0_i32 = arith.constant 0 : i32
    %c0_i32_0 = arith.constant 0 : i32
    %c0_i32_1 = arith.constant 0 : i32
    return %c0_i32, %c0_i32_0 : i32, i32
  }
  func.func @transform_7(%arg0: i32) -> (i32, i32) {
    %c0_i32 = arith.constant 0 : i32
    %c0_i32_0 = arith.constant 0 : i32
    return %arg0, %c0_i32 : i32, i32
  }
}

</mosaic_0001>

<bundles_post_ra>
// kernel: mlp_forward.1
= control target key start
LH: loop header
LB: loop body
LE: loop exit
PB: predicated region body
PF: predicated region fallthrough
CT: control target
= control target key end

     0   :  { %s1390_s24 = smov 0   ;;  %s1392_s25 = smov 0   ;;  %s1633_s0 = inlined_call_operand.vmem [shape: f32[19,128], index: 0, kind: input, shape index: {}]   ;;  %s1634_s1 = inlined_call_operand.vmem [shape: bf16[128,160], index: 1, kind: input, shape index: {}]   ;;  %s1635_s2 = inlined_call_operand.vmem [shape: f32[1,160], index: 2, kind: input, shape index: {}]   ;;  %s1636_s3 = inlined_call_operand.vmem [shape: bf16[160,160], index: 3, kind: input, shape index: {}]   ;;  %s1637_s4 = inlined_call_operand.vmem [shape: f32[1,160], index: 4, kind: input, shape index: {}]   ;;  %s1638_s5 = inlined_call_operand.vmem [shape: bf16[160,16], index: 5, kind: input, shape index: {}]   ;;  %s1639_s6 = inlined_call_operand.vmem [shape: f32[1,16], index: 6, kind: input, shape index: {}]   ;;  %s1640_s7 = inlined_call_operand.vmem [shape: bf16[19,16], index: 7, kind: output, shape index: {}]  }
   0x1   :  { %s1394_s26 = smov 0  }
   0x2 LB: > { %s1403_s27 = sadd.s32 4294967295, %s1315_s26   ;;  %s1405_s28 = sadd.s32 1, %s1315_s26   ;;  %s1315_s26 = sphi %s1394_s26, %s1644_s26   ;;  %s1311_s25 = sphi %s1392_s25, %s1643_s25   ;;  %s1307_s24 = sphi %s1390_s24, %s1642_s24  }
   0x3   : > { %s173_s29 = ssub.s32 %s1315_s26, %s1405_s28  ;;  %s176_s30 = sadd.s32 1, %s1311_s25 }
   0x4   : > { %p174_p0 = scmp.eq.s32.totalorder %s173_s29, 0  ;;  %p186_p1 = scmp.ne.s32.totalorder %s1311_s25, %s1307_s24 }
   0x5   : > { %p187_p2 = scmp.eq.s32.totalorder %s1403_s27, 1  ;;  %p1021_p3 = scmp.ge.s32.totalorder %s1315_s26, 1 }
   0x6   : > { %s1413_s8 = scalar_select %p174_p0, %s1311_s25, %s176_s30  }
   0x7   : > { %p1415_p4 = por %p187_p2, %p186_p1  ;;  %p246_p5 = scmp.lt.s32.totalorder %s1315_s26, 3 }
   0x9   : > { %p247_p6 = pnand %p1021_p3, %p246_p5 }
   0xa   : > { %v1189_v0 = vld [vmem:[%s1634_s1 + $0x4] ss:$8 sps:$4 sm:$0xff] (!%p247_p6)   ;;  %v1191_v1 = vld [vmem:[%s1634_s1] ss:$8 sps:$4 sm:$0xff] (!%p247_p6)   ;;  %v1349_v2 = vmov (!%p247_p6), 0   ;;  %s1442_s26 = sshll.u32 (!%p247_p6), %s1403_s27, 1  ;;  %v322_v47 = vlaneseq (!%p247_p6) }
   0xb   : > { %250 = sbr.rel (%p247_p6) target bundleno = 781 (0x30d), region = 48  ;;  %444 = vmatprep.mubr.bf16.mxu0 (!%p247_p6), %v1349_v2  ;;  %412 = vmatprep.subr.bf16.mxu0 (!%p247_p6), %v1189_v0  ;;  %v1192_v3 = vld [vmem:[%s1634_s1 + $0x14] ss:$8 sps:$4 sm:$0xff] (!%p247_p6)   ;;  %v1194_v4 = vld [vmem:[%s1634_s1 + $0x10] ss:$8 sps:$4 sm:$0xff] (!%p247_p6)   ;;  %p286_p7 = scmp.lt.s32.totalorder (!%p247_p6), %s1442_s26, 2 }
   0xc   : > { %413 = vmatpush1.bf16.msra.mxu0 (!%p247_p6), %v1191_v1  ;;  %v1195_v5 = vld [vmem:[%s1634_s1 + $0x24] ss:$8 sps:$4 sm:$0xff] (!%p247_p6)   ;;  %v1197_v6 = vld [vmem:[%s1634_s1 + $0x20] ss:$8 sps:$4 sm:$0xff] (!%p247_p6)   ;;  %v1198_v7 = vld [vmem:[%s1634_s1 + $0x34] ss:$8 sps:$4 sm:$0xff] (!%p247_p6)  }
   0xd   : > { %414 = vmatprep.subr.bf16.mxu0 (!%p247_p6), %v1192_v3  ;;  %v1200_v8 = vld [vmem:[%s1634_s1 + $0x30] ss:$8 sps:$4 sm:$0xff] (!%p247_p6)   ;;  %v1201_v9 = vld [vmem:[%s1634_s1 + $0x44] ss:$8 sps:$4 sm:$0xff] (!%p247_p6)   ;;  %v1215_v11 = vld [vmem:[%s1636_s3] ss:$8 sps:$4 sm:$0xff] (!%p247_p6)  }
   0xe   : > { %v1213_v10 = vld [vmem:[%s1636_s3 + $0x4] ss:$8 sps:$4 sm:$0xff] (!%p247_p6)   ;;  %v1216_v12 = vld [vmem:[%s1636_s3 + $0x14] ss:$8 sps:$4 sm:$0xff] (!%p247_p6)   ;;  %v1203_v13 = vld [vmem:[%s1634_s1 + $0x40] ss:$8 sps:$4 sm:$0xff] (!%p247_p6)  }
   0xf   : > { %597 = vmatprep.subr.bf16.mxu1 (!%p247_p6), %v1213_v10  ;;  %v1218_v14 = vld [vmem:[%s1636_s3 + $0x10] ss:$8 sps:$4 sm:$0xff] (!%p247_p6)   ;;  %v1204_v15 = vld [vmem:[%s1634_s1 + $0x54] ss:$8 sps:$4 sm:$0xff] (!%p247_p6)   ;;  %v1219_v16 = vld [vmem:[%s1636_s3 + $0x24] ss:$8 sps:$4 sm:$0xff] (!%p247_p6)  }
  0x10   : > { %415 = vmatpush1.bf16.msra.mxu0 (!%p247_p6), %v1194_v4  ;;  %598 = vmatpush1.bf16.msra.mxu1 (!%p247_p6), %v1215_v11  ;;  %v1206_v17 = vld [vmem:[%s1634_s1 + $0x50] ss:$8 sps:$4 sm:$0xff] (!%p247_p6)   ;;  %v1221_v18 = vld [vmem:[%s1636_s3 + $0x20] ss:$8 sps:$4 sm:$0xff] (!%p247_p6)   ;;  %v1207_v19 = vld [vmem:[%s1634_s1 + $0x64] ss:$8 sps:$4 sm:$0xff] (!%p247_p6)  }
  0x11   : > { %416 = vmatprep.subr.bf16.mxu0 (!%p247_p6), %v1195_v5  ;;  %599 = vmatprep.subr.bf16.mxu1 (!%p247_p6), %v1216_v12  ;;  %v1222_v20 = vld [vmem:[%s1636_s3 + $0x34] ss:$8 sps:$4 sm:$0xff] (!%p247_p6)   ;;  %v1209_v21 = vld [vmem:[%s1634_s1 + $0x60] ss:$8 sps:$4 sm:$0xff] (!%p247_p6)   ;;  %v1224_v22 = vld [vmem:[%s1636_s3 + $0x30] ss:$8 sps:$4 sm:$0xff] (!%p247_p6)  }
  0x12   : > { %s287_s20 = scalar_select %p286_p7, %s1442_s26, 2  ;;  %v1210_v23 = vld [vmem:[%s1634_s1 + $0x74] ss:$8 sps:$4 sm:$0xff]   ;;  %v1225_v24 = vld [vmem:[%s1636_s3 + $0x44] ss:$8 sps:$4 sm:$0xff]   ;;  %v323_v48 = vshrl.u32 %v322_v47, 7 }
  0x13   : > { %v1212_v25 = vld [vmem:[%s1634_s1 + $0x70] ss:$8 sps:$4 sm:$0xff]   ;;  %v1227_v28 = vld [vmem:[%s1636_s3 + $0x40] ss:$8 sps:$4 sm:$0xff]   ;;  %v1228_v29 = vld [vmem:[%s1636_s3 + $0x54] ss:$8 sps:$4 sm:$0xff]  }
  0x14   : > { %417 = vmatpush1.bf16.msra.mxu0 %v1197_v6  ;;  %s1024_s13 = sshll.u32 %s287_s20, 3  ;;  %600 = vmatpush1.bf16.msra.mxu1 %v1218_v14  ;;  %v1230_v31 = vld [vmem:[%s1636_s3 + $0x50] ss:$8 sps:$4 sm:$0xff]   ;;  %v1231_v32 = vld [vmem:[%s1636_s3 + $0x64] ss:$8 sps:$4 sm:$0xff]   ;;  %v324_v49 = vsub.s32 0, %v323_v48 }
  0x15   : > { %418 = vmatprep.subr.bf16.mxu0 %v1198_v7  ;;  %601 = vmatprep.subr.bf16.mxu1 %v1219_v16  ;;  %s289_s12 = scalar_lea.vmem %s1633_s0, %s1024_s13  ;;  %v1233_v33 = vld [vmem:[%s1636_s3 + $0x60] ss:$8 sps:$4 sm:$0xff]   ;;  %v1234_v34 = vld [vmem:[%s1636_s3 + $0x74] ss:$8 sps:$4 sm:$0xff]   ;;  %v1236_v35 = vld [vmem:[%s1636_s3 + $0x70] ss:$8 sps:$4 sm:$0xff]  }
  0x16   : > { %v301_v26 = vld [vmem:[%s289_s12] sm:$0xff]  ;;  %v302_v27 = vld [vmem:[%s289_s12 + $0x8] sm:$0xff]  ;;  %v1240_v38 = vld [vmem:[%s1636_s3 + $0x94] ss:$8 sps:$4 sm:$0xff]   ;;  %v328_v51 = vsub.s32 1, %v323_v48  ;;  %vm593_vm0 = vcmask 261120  }
  0x17   : > { %v303_v30 = vpack.c.bf16 %v302_v27, %v301_v26  ;;  %v1237_v36 = vld [vmem:[%s1636_s3 + $0x84] ss:$8 sps:$4 sm:$0xff]   ;;  %v1239_v37 = vld [vmem:[%s1636_s3 + $0x80] ss:$8 sps:$4 sm:$0xff]   ;;  %v1242_v39 = vld [vmem:[%s1636_s3 + $0x90] ss:$8 sps:$4 sm:$0xff]  }
  0x18   : > { %419 = vmatpush1.bf16.msra.mxu0 %v1200_v8  ;;  %602 = vmatpush1.bf16.msra.mxu1 %v1221_v18  ;;  %v1243_v40 = vld [vmem:[%s1638_s5] sm:$0xff]   ;;  %v1244_v41 = vld [vmem:[%s1638_s5 + $0x8] sm:$0xff]   ;;  %v1245_v42 = vld [vmem:[%s1638_s5 + $0x10] sm:$0xff]   ;;  %s278_s18 = sand.u32 1, %s1307_s24   ;;  %vm797_vm1 = vcmask 125952   ;;  %s808_s13 = ssub.s32 (%p1415_p4), 3, %s1442_s26 }
  0x19   : > { %420 = vmatprep.subr.bf16.mxu0 %v1201_v9  ;;  %603 = vmatprep.subr.bf16.mxu1 %v1222_v20  ;;  %v1246_v43 = vld [vmem:[%s1638_s5 + $0x18] sm:$0xff]   ;;  %v1247_v44 = vld [vmem:[%s1638_s5 + $0x20] sm:$0xff]   ;;  %v1248_v45 = vld [vmem:[%s1638_s5 + $0x28] sm:$0xff]   ;;  %s1022_s19 = sshll.u32 %s278_s18, 3  ;;  %s1097_s22 = sshll.u32 (%p1415_p4), %s1403_s27, 3 }
  0x1a   : > { %v1249_v46 = vld [vmem:[%s1638_s5 + $0x30] sm:$0xff]   ;;  %v320_v50 = vld [vmem:[%s1635_s2] sm:$0x3]  ;;  %v1250_v5 = vld [vmem:[%s1638_s5 + $0x38] sm:$0xff]   ;;  %s1588_s21 = scalar_lea.vmem [#allocation2], %s1022_s19   ;;  %p809_p8 = scmp.lt.s32.totalorder (%p1415_p4), %s808_s13, 2 }
  0x1b   : > { %v325_v52 = vrot.slane %v320_v50, %v324_v49  ;;  %v329_v53 = vrot.slane %v320_v50, %v328_v51  ;;  %v1251_v6 = vld [vmem:[%s1638_s5 + $0x40] sm:$0xff]   ;;  %v1252_v7 = vld [vmem:[%s1638_s5 + $0x48] sm:$0xff]   ;;  %s1599_s23 = scalar_lea.vmem (%p1415_p4), %s1640_s7, %s1097_s22  }
  0x1c   : > { %421 = vmatpush1.bf16.msra.mxu0 %v1203_v13  ;;  %604 = vmatpush1.bf16.msra.mxu1 %v1224_v22  ;;  %v481_v8 = vld [vmem:[%s1637_s4] sm:$0x3] }
  0x1d   : > { %422 = vmatprep.subr.bf16.mxu0 %v1204_v15  ;;  %605 = vmatprep.subr.bf16.mxu1 %v1225_v24  ;;  %v486_v9 = vrot.slane %v481_v8, %v324_v49  ;;  %v490_v10 = vrot.slane %v481_v8, %v328_v51  ;;  %v1062_v24 = vld [vmem:[%s1639_s6] ss:$0 sm:$0xff] }
  0x20   : > { %423 = vmatpush1.bf16.msra.mxu0 %v1206_v17  ;;  %606 = vmatpush1.bf16.msra.mxu1 %v1227_v28 }
  0x21   : > { %424 = vmatprep.subr.bf16.mxu0 %v1207_v19  ;;  %607 = vmatprep.subr.bf16.mxu1 %v1228_v29 }
  0x24   : > { %425 = vmatpush1.bf16.msra.mxu0 %v1209_v21  ;;  %608 = vmatpush1.bf16.msra.mxu1 %v1230_v31 }
  0x25   : > { %426 = vmatprep.subr.bf16.mxu0 %v1210_v23  ;;  %609 = vmatprep.subr.bf16.mxu1 %v1231_v32 }
  0x28   : > { %427 = vmatpush1.bf16.msra.mxu0 %v1212_v25  ;;  %610 = vmatpush1.bf16.msra.mxu1 %v1233_v33 }
  0x29   : > { %736 = vmatprep.subr.bf16.mxu0 %v1349_v2  ;;  %611 = vmatprep.subr.bf16.mxu1 %v1234_v34 }
  0x2b   : > { %445 = vmatmul.mubr.bf16.vlgmr.msra.gmra.mrb[0].mxu0 %v303_v30 }
  0x2c   : > { %612 = vmatpush1.bf16.msra.mxu1 %v1236_v35  ;;  %737 = vmatpush1.bf16.msra.mxu0 %v1243_v40 }
  0x2d   : > { %613 = vmatprep.subr.bf16.mxu1 %v1237_v36  ;;  %738 = vmatprep.subr.bf16.mxu0 %v1349_v2 }
  0x30   : > { %614 = vmatpush1.bf16.msra.mxu1 %v1239_v37  ;;  %739 = vmatpush1.bf16.msra.mxu0 %v1244_v41 }
  0x31   : > { %615 = vmatprep.subr.bf16.mxu1 %v1240_v38  ;;  %740 = vmatprep.subr.bf16.mxu0 %v1349_v2 }
  0x34   : > { %616 = vmatpush1.bf16.msra.mxu1 %v1242_v39  ;;  %741 = vmatpush1.bf16.msra.mxu0 %v1245_v42 }
  0x35   : > { %742 = vmatprep.subr.bf16.mxu0 %v1349_v2 }
  0x38   : > { %743 = vmatpush1.bf16.msra.mxu0 %v1246_v43 }
  0x39   : > { %744 = vmatprep.subr.bf16.mxu0 %v1349_v2 }
  0x3c   : > { %745 = vmatpush1.bf16.msra.mxu0 %v1247_v44 }
  0x3d   : > { %746 = vmatprep.subr.bf16.mxu0 %v1349_v2 }
  0x40   : > { %747 = vmatpush1.bf16.msra.mxu0 %v1248_v45 }
  0x41   : > { %748 = vmatprep.subr.bf16.mxu0 %v1349_v2 }
  0x44   : > { %749 = vmatpush1.bf16.msra.mxu0 %v1249_v46 }
  0x45   : > { %750 = vmatprep.subr.bf16.mxu0 %v1349_v2 }
  0x48   : > { %751 = vmatpush1.bf16.msra.mxu0 %v1250_v5 }
  0x49   : > { %752 = vmatprep.subr.bf16.mxu0 %v1349_v2 }
  0x4c   : > { %753 = vmatpush1.bf16.msra.mxu0 %v1251_v6 }
  0x4d   : > { %754 = vmatprep.subr.bf16.mxu0 %v1349_v2 }
  0x50   : > { %755 = vmatpush1.bf16.msra.mxu0 %v1252_v7 }
  0xfe   : > { %v446_v54 = vpop.f32.mrb[0].mxu0 }
  0xff   : > { %v447_v55 = vadd.f32 %v446_v54, %v325_v52  ;;  %v448_v56 = vpop.f32.mrb[1].mxu0 }
 0x100   : > { %v449_v57 = vadd.f32 %v448_v56, %v329_v53  ;;  %v450_v58 = vpop.f32.mrb[2].mxu0 }
 0x101   : > { %v451_v59 = vadd.f32 %v450_v58, %v325_v52  ;;  %v452_v60 = vpop.f32.mrb[3].mxu0  ;;  %v455_v62 = vmax.f32 %v447_v55, 0.0 }
 0x102   : > { %v453_v61 = vadd.f32 %v452_v60, %v329_v53  ;;  %v456_v0 = vmax.f32 %v449_v57, 0.0 }
 0x103   : > { %v457_v63 = vmax.f32 %v451_v59, 0.0 }
 0x104   : > { %v458_v1 = vmax.f32 %v453_v61, 0.0 }
 0x105   : > { %v459_v3 = vpack.c.bf16 %v457_v63, %v455_v62 }
 0x106   : > { %v460_v4 = vpack.c.bf16 %v458_v1, %v456_v0 }
 0x108   : > { %1061 = vmatprep.mubr.msk.bf16.mxu1 %vm593_vm0, %v460_v4 }
 0x109   : > { %630 = vmatmul.mubr.bf16.vlgmr.msra.gmra.mrb[0].mxu1 %v459_v3 }
 0x1dc   : > { %v631_v11 = vpop.f32.mrb[0].mxu1 }
 0x1dd   : > { %v632_v12 = vadd.f32 %v631_v11, %v486_v9  ;;  %v633_v13 = vpop.f32.mrb[1].mxu1 }
 0x1de   : > { %v634_v14 = vadd.f32 %v633_v13, %v490_v10  ;;  %v635_v15 = vpop.f32.mrb[2].mxu1 }
 0x1df   : > { %v636_v16 = vadd.f32 %v635_v15, %v486_v9  ;;  %v637_v17 = vpop.f32.mrb[3].mxu1  ;;  %v640_v2 = vmax.f32 %v632_v12, 0.0 }
 0x1e0   : > { %v638_v18 = vadd.f32 %v637_v17, %v490_v10  ;;  %v641_v20 = vmax.f32 %v634_v14, 0.0 }
 0x1e1   : > { %v642_v19 = vmax.f32 %v636_v16, 0.0 }
 0x1e2   : > { %v643_v21 = vmax.f32 %v638_v18, 0.0 }
 0x1e3   : > { %v644_v22 = vpack.c.bf16 %v642_v19, %v640_v2 }
 0x1e4   : > { %v645_v23 = vpack.c.bf16 %v643_v21, %v641_v20 }
 0x1e6   : > { %1073 = vmatprep.mubr.msk.bf16.mxu0 %vm593_vm0, %v645_v23 }
 0x1e7   : > { %769 = vmatmul.mubr.bf16.vlgmr.msra.gmra.mrb[4].mxu0 %v644_v22 }
 0x2ba   : > { %v770_v25 = vpop.f32.mrb[4].mxu0 }
 0x2bb   : > { %v771_v26 = vadd.f32 %v1062_v24, %v770_v25  ;;  %v772_v27 = vpop.f32.mrb[5].mxu0 }
 0x2bc   : > { %v773_v28 = vpop.f32.mrb[6].mxu0 }
 0x2bd   : > { %v1074_v29 = vmul.f32 -1.442695, %v771_v26  ;;  %v774_v30 = vadd.f32 %v1062_v24, %v773_v28  ;;  %v775_v31 = vpop.f32.mrb[7].mxu0 }
 0x2bf   : > { %1253 = vpow2.f32 %v1074_v29  ;;  %v1075_v32 = vmul.f32 -1.442695, %v774_v30 }
 0x2c1   : > { %1255 = vpow2.f32 %v1075_v32 }
 0x2c9   : > { %v1254_v33 = vpop.eup %1253 }
 0x2ca   : > { %v783_v34 = vadd.f32 1.0, %v1254_v33 }
 0x2cb   : > { %v1256_v35 = vpop.eup %1255 }
 0x2cc   : > { %1257 = vrcp.f32 %v783_v34  ;;  %v784_v36 = vadd.f32 1.0, %v1256_v35 }
 0x2ce   : > { %1259 = vrcp.f32 %v784_v36 }
 0x2d5   : > { %806 = sbr.rel (!%p1415_p4) target bundleno = 781 (0x30d), region = 52 }
 0x2d6   : > { %v1258_v37 = vpop.eup %1257 }
 0x2d7   : > { %v1095_v38 = vpack.c.bf16 %v1258_v37, %v1258_v37 }
 0x2d8   : > { %v1260_v39 = vpop.eup %1259 }
 0x2d9   : > { %798 = vst.msk [vmem:[%s1588_s21] sm:$0xf] %vm797_vm1, %v1095_v38  ;;  %v1096_v40 = vpack.c.bf16 %v1260_v39, %v1260_v39 }
 0x2db   : > { %799 = vst.msk [vmem:[%s1588_s21 + $0x4] sm:$0xf] %vm797_vm1, %v1096_v40 }
 0x2dc   : > { %s1646_s13 = smov (!%p809_p8, %s808_s13), 2 }
 0x2dd   : > { %s1080_s29 = sshll.u32 %s1646_s13, 6 }
 0x2de   : > { %p1083_p9 = scmp.eq.s32.totalorder %s1080_s29, 0 }
 0x2df   : > { %s1605_s30 = sshrl.u32 (!%p1083_p9), %s1646_s13, 1 }
 0x2e0   : > { %817 = sbr.rel (%p1083_p9) target bundleno = 781 (0x30d), region = 56  ;;  %p1084_p10 = scmp.le.s32.totalorder (!%p1083_p9), %s1605_s30, 0 }
 0x2e7   : > { %974 = sbr.rel (%p1084_p10) target bundleno = 760 (0x2f8), region = 128  ;;  %s1317_s27 = smov (!%p1084_p10), %s1599_s23  }
 0x2e8   : > { %s1321_s9 = smov (!%p1084_p10), %s1588_s21   ;;  %s1325_s26 = smov (!%p1084_p10), 0  }
 0x2e9   : > { %s1329_s10 = smov (!%p1084_p10), 0  }
 0x2ee LB: >> { %v833_v41 = vld [vmem:[%s1323_s9] sm:$0xf]  ;;  %v835_v42 = vld [vmem:[%s1323_s9 + $0x4] sm:$0xf]  ;;  %s837_s11 = sadd.s32 1, %s1327_s26  ;;  %s827_s10 = sadd.s32 1, %s1331_s10   ;;  %s1331_s10 = sphi %s1329_s10, %s827_s10   ;;  %s1327_s26 = sphi %s1325_s26, %s1326_s26   ;;  %s1323_s9 = sphi %s1321_s9, %s842_s9   ;;  %s1319_s27 = sphi %s1317_s27, %s843_s27  }
 0x2ef   : >> { %834 = vst [vmem:[%s1319_s27] sm:$0xf] %v833_v41  ;;  %836 = vst [vmem:[%s1319_s27 + $0x4] sm:$0xf] %v835_v42  ;;  %p838_p11 = scmp.ge.s32.totalorder %s837_s11, %s1605_s30  ;;  %p826_p12 = scmp.ge.s32.totalorder %s827_s10, %s1605_s30 }
 0x2f1   : >> { %s1648_s11 = smov (%p838_p11, %s837_s11), 0  ;;  %829 = sbr.rel (!%p826_p12) target bundleno = 750 (0x2ee), region = 134 }
 0x2f2   : >> { %s1085_s12 = sshll.u32 %s1648_s11, 3  ;;  %s1326_s26 = smov %s1648_s11  }
 0x2f3   : >> { %s842_s9 = scalar_lea.vmem %s1588_s21, %s1085_s12 [#allocation2]   ;;  %s843_s27 = scalar_lea.vmem %s1599_s23, %s1085_s12  }
 0x2f8 PF: > { %s1615_s14 = sand.u32 1, %s1646_s13   ;;  %s1098_s15 = sshll.u32 %s1605_s30, 3 }
 0x2f9   : > { %s848_s16 = scalar_lea.vmem %s1588_s21, %s1098_s15 [#allocation2]   ;;  %s850_s17 = scalar_lea.vmem %s1599_s23, %s1098_s15  }
 0x2fa   : > { %p1090_p13 = scmp.le.s32.totalorder %s1615_s14, 0 }
 0x2fb   : > { %s1333_s18 = smov (!%p1090_p13), %s850_s17   ;;  %s1337_s19 = smov (!%p1090_p13), %s848_s16  }
 0x2fc   : > { %988 = sbr.rel (%p1090_p13) target bundleno = 781 (0x30d), region = 139  ;;  %s1341_s22 = smov (!%p1090_p13), 0  }
 0x2fd   : > { %s1345_s24 = smov (!%p1090_p13), 0  }
 0x303 LB: >> { %v860_v43 = vld [vmem:[%s1339_s19] sm:$0xf]  ;;  %s862_s13 = sadd.s32 1, %s1343_s22  ;;  %s854_s24 = sadd.s32 1, %s1347_s24   ;;  %s1347_s24 = sphi %s1345_s24, %s854_s24   ;;  %s1343_s22 = sphi %s1341_s22, %s1342_s22   ;;  %s1339_s19 = sphi %s1337_s19, %s867_s19   ;;  %s1335_s18 = sphi %s1333_s18, %s868_s18  }
 0x304   : >> { %861 = vst [vmem:[%s1335_s18] sm:$0xf] %v860_v43  ;;  %p863_p0 = scmp.ge.s32.totalorder %s862_s13, %s1615_s14  ;;  %p853_p1 = scmp.ge.s32.totalorder %s854_s24, %s1615_s14 }
 0x306   : >> { %s1650_s13 = smov (%p863_p0, %s862_s13), 0  ;;  %856 = sbr.rel (!%p853_p1) target bundleno = 771 (0x303), region = 145 }
 0x307   : >> { %s1091_s21 = sshll.u32 %s1650_s13, 2  ;;  %s1342_s22 = smov %s1650_s13  }
 0x308   : >> { %s867_s19 = scalar_lea.vmem %s848_s16, %s1091_s21 [#allocation2]   ;;  %s868_s18 = scalar_lea.vmem %s850_s17, %s1091_s21  }
 0x30d PF: > { %p14_p2 = scmp.ge.s32.totalorder %s1405_s28, 4   ;;  %s1642_s24 = smov %s1311_s25 }
 0x30e   : > { %s1643_s25 = smov %s1413_s8  ;;  %s1644_s26 = smov %s1405_s28 }
 0x30f   :  { %16 = sbr.rel (!%p14_p2) target bundleno = 2 (0x2), region = 156 }

</bundles_post_ra>
